<compile_context>
chip_gen: v7x
topology: tpu7x:2x2x1
jax: 0.10.0
libtpu: 0.0.40
codegen_flags: <defaults>
</compile_context>

<pallas_src>
import functools

import jax
import jax.numpy as jnp
from jax.experimental import pallas as pl
from jax.experimental.pallas import tpu as pltpu


def _round_up(v: int, m: int) -> int:
    return (v + m - 1) // m * m


# ----------------------------- Pallas kernel --------------------------------

def _fused_action_net_kernel(adj_ref, w_ref, b_ref, x_ref, o_ref, *, num_layers):
    """All L WeightedGNNConv layers fused in one kernel invocation.

    adj_ref : [2, Np, Np]   bf16  adj_ref[0]=env, adj_ref[1]=act adjacency
                                  (A[i, j] = weight of edge j->i, zero-padded)
    w_ref   : [L, 2, Fp, Fp] bf16 w_ref[l, 0]=W_self, w_ref[l, 1]=W_neigh (padded)
    b_ref   : [L, 1, Fp]    f32   biases, zero-padded
    x_ref   : [Np, Fp]      bf16  node features, zero-padded
    o_ref   : [Np, Fp]      f32   final-layer output (lane-dense; sliced in wrapper)
    """
    # Hoisted out of the unrolled layer loop: only two distinct adjacencies.
    a_env = adj_ref[0]
    a_act = adj_ref[1]

    x_bf = x_ref[...]                                     # bf16 activations
    out = None
    for layer in range(num_layers):                       # static unroll (L is tiny)
        a = a_env if layer == 0 else a_act
        # message aggregation: agg = A @ X  (sum of edge_attr * x_src per dst), f32 acc
        agg = jnp.dot(a, x_bf, preferred_element_type=jnp.float32)
        # Linear(concat(x, agg)) without the concat: two accumulating MXU dots.
        out = (jnp.dot(x_bf, w_ref[layer, 0], preferred_element_type=jnp.float32)
               + jnp.dot(agg.astype(jnp.bfloat16), w_ref[layer, 1],
                         preferred_element_type=jnp.float32)
               + b_ref[layer])
        if layer < num_layers - 1:
            out = jnp.maximum(out, 0.0)                   # ReLU
            # TODO(synk): dropout is identity in eval mode; stochastic dropout
            # (training mode) is not implemented.
            x_bf = out.astype(jnp.bfloat16)
    o_ref[...] = out                                      # f32, lane-dense store


def fused_action_net(adj_all, w_all, b_all, x_pad, *, num_layers):
    """Single-invocation pallas_call, full-array blocks (small / padded shapes)."""
    n_pad, f_pad = x_pad.shape
    kernel = functools.partial(_fused_action_net_kernel, num_layers=num_layers)

    flops = num_layers * (2 * n_pad * n_pad * f_pad            # A @ X
                          + 2 * 2 * n_pad * f_pad * f_pad)     # two [Np,Fp]@[Fp,Fp]
    bytes_accessed = (2 * (adj_all.size + w_all.size + x_pad.size)   # bf16 operands
                      + 4 * (b_all.size + n_pad * f_pad))            # f32 bias + out

    return pl.pallas_call(
        kernel,
        out_shape=jax.ShapeDtypeStruct((n_pad, f_pad), jnp.float32),
        grid=(1,),
        in_specs=[
            pl.BlockSpec(adj_all.shape, lambda i: (0, 0, 0)),
            pl.BlockSpec(w_all.shape, lambda i: (0, 0, 0, 0)),
            pl.BlockSpec(b_all.shape, lambda i: (0, 0, 0)),
            pl.BlockSpec(x_pad.shape, lambda i: (0, 0)),
        ],
        out_specs=pl.BlockSpec((n_pad, f_pad), lambda i: (0, 0)),
        compiler_params=pltpu.CompilerParams(
            dimension_semantics=("arbitrary",)),
        cost_estimate=pl.CostEstimate(
            flops=flops, transcendentals=0, bytes_accessed=bytes_accessed),
    )(adj_all, w_all, b_all, x_pad)


# ------------------------------- Glue / model --------------------------------

def build_dense_adj(edge_index, edge_attr, num_nodes, padded_nodes=None):
    """A[dst, src] += edge_attr  (edge_attr=None -> weight 1); zero-padded."""
    # TODO(synk): for E << N^2 build the adjacency inside the kernel from
    # scalar-prefetched edge lists (or use gather-accumulate) instead of this
    # host-side O(N^2) scatter.
    padded_nodes = num_nodes if padded_nodes is None else padded_nodes
    src = edge_index[0]
    dst = edge_index[1]
    w = (jnp.ones(src.shape, jnp.float32) if edge_attr is None
         else edge_attr.astype(jnp.float32))
    adj = jnp.zeros((padded_nodes, padded_nodes), jnp.float32)
    return adj.at[dst, src].add(w)


def init_action_net_params(key, in_dim, hidden_dim, out_dim, num_layers):
    """num_layers WeightedGNNConv layers: fused Linear weight [2*d_in, d_out] + bias."""
    dims = [in_dim] + [hidden_dim] * (num_layers - 1) + [out_dim]
    params = []
    for i in range(num_layers):
        d_in, d_out = dims[i], dims[i + 1]
        key, k1, k2 = jax.random.split(key, 3)
        scale = 1.0 / jnp.sqrt(2.0 * d_in)
        w_fused = jax.random.uniform(k1, (2 * d_in, d_out), jnp.float32, -scale, scale)
        bias = jax.random.uniform(k2, (d_out,), jnp.float32, -scale, scale)
        params.append((w_fused, bias))
    return params


def action_net_forward(params, x, edge_index, env_edge_attr, act_edge_attr):
    """Pallas-backed ActionNet forward. Dropout = identity (eval), act = ReLU."""
    num_layers = len(params)
    num_nodes, in_dim = x.shape
    out_dim = params[-1][1].shape[0]
    dims = [in_dim] + [w.shape[1] for (w, _) in params]

    f_pad = _round_up(max(dims), 128)      # lane-dense feature / output width
    n_pad = _round_up(num_nodes, 16)       # bf16 sublane tile only (NOT 128)

    # Hoisted: only 2 distinct adjacencies regardless of L (env for layer 0, act after).
    adj_env = build_dense_adj(edge_index, env_edge_attr, num_nodes, n_pad)
    adj_act = build_dense_adj(edge_index, act_edge_attr, num_nodes, n_pad)
    adj_all = jnp.stack([adj_env, adj_act], axis=0).astype(jnp.bfloat16)  # [2, Np, Np]

    # Split each fused Linear weight into (W_self, W_neigh), pad to [2, Fp, Fp] bf16.
    w_list, b_list = [], []
    for (w_fused, b) in params:
        d_in2, d_out = w_fused.shape
        d_in = d_in2 // 2
        w_pad = jnp.zeros((2, f_pad, f_pad), jnp.float32)
        w_pad = w_pad.at[0, :d_in, :d_out].set(w_fused[:d_in])     # W_self
        w_pad = w_pad.at[1, :d_in, :d_out].set(w_fused[d_in:])     # W_neigh
        b_pad = jnp.zeros((1, f_pad), jnp.float32).at[0, :d_out].set(b)
        w_list.append(w_pad)
        b_list.append(b_pad)
    w_all = jnp.stack(w_list, axis=0).astype(jnp.bfloat16)          # [L, 2, Fp, Fp]
    b_all = jnp.stack(b_list, axis=0)                                # [L, 1, Fp] f32

    x_pad = (jnp.zeros((n_pad, f_pad), jnp.bfloat16)
             .at[:num_nodes, :in_dim].set(x.astype(jnp.bfloat16)))

    out_pad = fused_action_net(adj_all, w_all, b_all, x_pad, num_layers=num_layers)
    return out_pad[:num_nodes, :out_dim]


# ---------------------------- Pure-JAX reference -----------------------------

def _ref_forward(params, x, edge_index, env_edge_attr, act_edge_attr):
    """f32 reference with the original concat(x, agg) @ W_fused semantics."""
    num_layers = len(params)
    num_nodes = x.shape[0]
    edge_attrs = [env_edge_attr] + (num_layers - 1) * [act_edge_attr]
    for idx, (w_fused, b) in enumerate(params):
        adj = build_dense_adj(edge_index, edge_attrs[idx], num_nodes)
        agg = adj @ x
        x = jnp.concatenate([x, agg], axis=-1) @ w_fused + b
        if idx < num_layers - 1:
            x = jnp.maximum(x, 0.0)
    return x


# ----------------------------------- Main ------------------------------------

if __name__ == "__main__":
    key = jax.random.PRNGKey(0)

    # Small graph: N nodes, E directed edges.
    num_nodes = 16
    num_edges = 48
    in_dim = 32
    hidden_dim = 32
    out_dim = 2          # action logits (e.g. in/out gumbel choice in CoGNN)
    num_layers = 2

    key, k_x, k_src, k_dst, k_env, k_act, k_p = jax.random.split(key, 7)
    x = jax.random.normal(k_x, (num_nodes, in_dim), jnp.float32)
    src = jax.random.randint(k_src, (num_edges,), 0, num_nodes)
    dst = jax.random.randint(k_dst, (num_edges,), 0, num_nodes)
    edge_index = jnp.stack([src, dst], axis=0)               # [2, E]
    env_edge_attr = jax.random.uniform(k_env, (num_edges,), jnp.float32)
    act_edge_attr = jax.random.uniform(k_act, (num_edges,), jnp.float32)

    params = init_action_net_params(k_p, in_dim, hidden_dim, out_dim, num_layers)

    out = action_net_forward(params, x, edge_index, env_edge_attr, act_edge_attr)
    out = jax.block_until_ready(out)

    ref = _ref_forward(params, x, edge_index, env_edge_attr, act_edge_attr)
    assert out.shape == (num_nodes, out_dim), out.shape
    # bf16 MXU operands with f32 accumulation -> compare with a relative bound.
    rel_err = jnp.max(jnp.abs(out - ref)) / (jnp.max(jnp.abs(ref)) + 1e-6)
    assert rel_err < 5e-2, f"mismatch: normalized max err {rel_err}"

    print("KERNEL_OK")
</pallas_src>

<mosaic_0001>
module attributes {stable_mosaic.version = 11 : i64} {
  func.func @_fused_action_net_kernel(%arg0: i32, %arg1: memref<2x16x16xbf16, #tpu.memory_space<vmem>>, %arg2: memref<2x2x128x128xbf16, #tpu.memory_space<vmem>>, %arg3: memref<2x1x128xf32, #tpu.memory_space<vmem>>, %arg4: memref<16x128xbf16, #tpu.memory_space<vmem>>, %arg5: memref<16x128xf32, #tpu.memory_space<vmem>>) attributes {dimension_semantics = [#tpu.dimension_semantics<arbitrary>], iteration_bounds = array<i64: 1>, scalar_prefetch = 0 : i64, scratch_operands = 0 : i64, tpu.core_type = #tpu.core_type<tc>, window_params = [{pipeline_mode = #tpu.pipeline_mode<synchronous>, transform_indices = @transform_0, window_bounds = array<i64: 2, 16, 16>}, {pipeline_mode = #tpu.pipeline_mode<synchronous>, transform_indices = @transform_1, window_bounds = array<i64: 2, 2, 128, 128>}, {pipeline_mode = #tpu.pipeline_mode<synchronous>, transform_indices = @transform_2, window_bounds = array<i64: 2, 1, 128>}, {pipeline_mode = #tpu.pipeline_mode<synchronous>, transform_indices = @transform_3, window_bounds = array<i64: 16, 128>}, {pipeline_mode = #tpu.pipeline_mode<synchronous>, transform_indices = @transform_4, window_bounds = array<i64: 16, 128>}]} {
    %c0 = arith.constant 0 : index
    %c0_0 = arith.constant 0 : index
    %c0_1 = arith.constant 0 : index
    %0 = vector.load %arg1[%c0, %c0_0, %c0_1] : memref<2x16x16xbf16, #tpu.memory_space<vmem>>, vector<1x16x16xbf16>
    %1 = vector.shape_cast %0 : vector<1x16x16xbf16> to vector<16x16xbf16>
    %c1 = arith.constant 1 : index
    %c0_2 = arith.constant 0 : index
    %c0_3 = arith.constant 0 : index
    %2 = vector.load %arg1[%c1, %c0_2, %c0_3] : memref<2x16x16xbf16, #tpu.memory_space<vmem>>, vector<1x16x16xbf16>
    %3 = vector.shape_cast %2 : vector<1x16x16xbf16> to vector<16x16xbf16>
    %c0_4 = arith.constant 0 : index
    %c0_5 = arith.constant 0 : index
    %4 = vector.load %arg4[%c0_4, %c0_5] : memref<16x128xbf16, #tpu.memory_space<vmem>>, vector<16x128xbf16>
    %cst = arith.constant dense<0.000000e+00> : vector<16x128xf32>
    %5 = tpu.matmul %1, %4, %cst {dimension_numbers = #tpu.dot_dimension_numbers<[1], [0], [0], [1], [0, 0, 1, 1], [], []>} : vector<16x16xbf16>, vector<16x128xbf16>, vector<16x128xf32> -> vector<16x128xf32>
    %c0_6 = arith.constant 0 : index
    %c0_7 = arith.constant 0 : index
    %c0_8 = arith.constant 0 : index
    %c0_9 = arith.constant 0 : index
    %6 = vector.load %arg2[%c0_6, %c0_7, %c0_8, %c0_9] : memref<2x2x128x128xbf16, #tpu.memory_space<vmem>>, vector<1x1x128x128xbf16>
    %7 = vector.shape_cast %6 : vector<1x1x128x128xbf16> to vector<128x128xbf16>
    %cst_10 = arith.constant dense<0.000000e+00> : vector<16x128xf32>
    %8 = tpu.matmul %4, %7, %cst_10 {dimension_numbers = #tpu.dot_dimension_numbers<[1], [0], [0], [1], [0, 0, 1, 1], [], []>} : vector<16x128xbf16>, vector<128x128xbf16>, vector<16x128xf32> -> vector<16x128xf32>
    %9 = arith.truncf %5 : vector<16x128xf32> to vector<16x128xbf16>
    %c0_11 = arith.constant 0 : index
    %c1_12 = arith.constant 1 : index
    %c0_13 = arith.constant 0 : index
    %c0_14 = arith.constant 0 : index
    %10 = vector.load %arg2[%c0_11, %c1_12, %c0_13, %c0_14] : memref<2x2x128x128xbf16, #tpu.memory_space<vmem>>, vector<1x1x128x128xbf16>
    %11 = vector.shape_cast %10 : vector<1x1x128x128xbf16> to vector<128x128xbf16>
    %cst_15 = arith.constant dense<0.000000e+00> : vector<16x128xf32>
    %12 = tpu.matmul %9, %11, %cst_15 {dimension_numbers = #tpu.dot_dimension_numbers<[1], [0], [0], [1], [0, 0, 1, 1], [], []>} : vector<16x128xbf16>, vector<128x128xbf16>, vector<16x128xf32> -> vector<16x128xf32>
    %13 = arith.addf %8, %12 : vector<16x128xf32>
    %c0_16 = arith.constant 0 : index
    %c0_17 = arith.constant 0 : index
    %c0_18 = arith.constant 0 : index
    %14 = vector.load %arg3[%c0_16, %c0_17, %c0_18] : memref<2x1x128xf32, #tpu.memory_space<vmem>>, vector<1x1x128xf32>
    %15 = vector.shape_cast %14 : vector<1x1x128xf32> to vector<1x128xf32>
    %16 = vector.broadcast %15 : vector<1x128xf32> to vector<16x128xf32>
    %17 = arith.addf %13, %16 : vector<16x128xf32>
    %cst_19 = arith.constant 0.000000e+00 : f32
    %18 = vector.broadcast %cst_19 : f32 to vector<16x128xf32>
    %19 = arith.maximumf %17, %18 : vector<16x128xf32>
    %20 = arith.truncf %19 : vector<16x128xf32> to vector<16x128xbf16>
    %cst_20 = arith.constant dense<0.000000e+00> : vector<16x128xf32>
    %21 = tpu.matmul %3, %20, %cst_20 {dimension_numbers = #tpu.dot_dimension_numbers<[1], [0], [0], [1], [0, 0, 1, 1], [], []>} : vector<16x16xbf16>, vector<16x128xbf16>, vector<16x128xf32> -> vector<16x128xf32>
    %c1_21 = arith.constant 1 : index
    %c0_22 = arith.constant 0 : index
    %c0_23 = arith.constant 0 : index
    %c0_24 = arith.constant 0 : index
    %22 = vector.load %arg2[%c1_21, %c0_22, %c0_23, %c0_24] : memref<2x2x128x128xbf16, #tpu.memory_space<vmem>>, vector<1x1x128x128xbf16>
    %23 = vector.shape_cast %22 : vector<1x1x128x128xbf16> to vector<128x128xbf16>
    %cst_25 = arith.constant dense<0.000000e+00> : vector<16x128xf32>
    %24 = tpu.matmul %20, %23, %cst_25 {dimension_numbers = #tpu.dot_dimension_numbers<[1], [0], [0], [1], [0, 0, 1, 1], [], []>} : vector<16x128xbf16>, vector<128x128xbf16>, vector<16x128xf32> -> vector<16x128xf32>
    %25 = arith.truncf %21 : vector<16x128xf32> to vector<16x128xbf16>
    %c1_26 = arith.constant 1 : index
    %c1_27 = arith.constant 1 : index
    %c0_28 = arith.constant 0 : index
    %c0_29 = arith.constant 0 : index
    %26 = vector.load %arg2[%c1_26, %c1_27, %c0_28, %c0_29] : memref<2x2x128x128xbf16, #tpu.memory_space<vmem>>, vector<1x1x128x128xbf16>
    %27 = vector.shape_cast %26 : vector<1x1x128x128xbf16> to vector<128x128xbf16>
    %cst_30 = arith.constant dense<0.000000e+00> : vector<16x128xf32>
    %28 = tpu.matmul %25, %27, %cst_30 {dimension_numbers = #tpu.dot_dimension_numbers<[1], [0], [0], [1], [0, 0, 1, 1], [], []>} : vector<16x128xbf16>, vector<128x128xbf16>, vector<16x128xf32> -> vector<16x128xf32>
    %29 = arith.addf %24, %28 : vector<16x128xf32>
    %c1_31 = arith.constant 1 : index
    %c0_32 = arith.constant 0 : index
    %c0_33 = arith.constant 0 : index
    %30 = vector.load %arg3[%c1_31, %c0_32, %c0_33] : memref<2x1x128xf32, #tpu.memory_space<vmem>>, vector<1x1x128xf32>
    %31 = vector.shape_cast %30 : vector<1x1x128xf32> to vector<1x128xf32>
    %32 = vector.broadcast %31 : vector<1x128xf32> to vector<16x128xf32>
    %33 = arith.addf %29, %32 : vector<16x128xf32>
    %c0_34 = arith.constant 0 : index
    %c0_35 = arith.constant 0 : index
    %34 = vector.load %arg5[%c0_34, %c0_35] : memref<16x128xf32, #tpu.memory_space<vmem>>, vector<16x128xf32>
    tpu.vector_store %arg5[%c0_34, %c0_35], %33 {strides = array<i32>} : memref<16x128xf32, #tpu.memory_space<vmem>>, vector<16x128xf32>,
    return
  }
  func.func @transform_0(%arg0: i32) -> (i32, i32, i32) {
    %c0_i32 = arith.constant 0 : i32
    %c0_i32_0 = arith.constant 0 : i32
    %c0_i32_1 = arith.constant 0 : i32
    %c0_i32_2 = arith.constant 0 : i32
    return %c0_i32, %c0_i32_0, %c0_i32_1 : i32, i32, i32
  }
  func.func @transform_1(%arg0: i32) -> (i32, i32, i32, i32) {
    %c0_i32 = arith.constant 0 : i32
    %c0_i32_0 = arith.constant 0 : i32
    %c0_i32_1 = arith.constant 0 : i32
    %c0_i32_2 = arith.constant 0 : i32
    %c0_i32_3 = arith.constant 0 : i32
    return %c0_i32, %c0_i32_0, %c0_i32_1, %c0_i32_2 : i32, i32, i32, i32
  }
  func.func @transform_2(%arg0: i32) -> (i32, i32, i32) {
    %c0_i32 = arith.constant 0 : i32
    %c0_i32_0 = arith.constant 0 : i32
    %c0_i32_1 = arith.constant 0 : i32
    %c0_i32_2 = arith.constant 0 : i32
    return %c0_i32, %c0_i32_0, %c0_i32_1 : i32, i32, i32
  }
  func.func @transform_3(%arg0: i32) -> (i32, i32) {
    %c0_i32 = arith.constant 0 : i32
    %c0_i32_0 = arith.constant 0 : i32
    %c0_i32_1 = arith.constant 0 : i32
    return %c0_i32, %c0_i32_0 : i32, i32
  }
  func.func @transform_4(%arg0: i32) -> (i32, i32) {
    %c0_i32 = arith.constant 0 : i32
    %c0_i32_0 = arith.constant 0 : i32
    %c0_i32_1 = arith.constant 0 : i32
    return %c0_i32, %c0_i32_0 : i32, i32
  }
}

</mosaic_0001>

<bundles_post_ra>
// kernel: tpu_custom_call.1
= control target key start
LH: loop header
LB: loop body
LE: loop exit
PB: predicated region body
PF: predicated region fallthrough
CT: control target
= control target key end

     0   :  { %9 = vsyncpa [#allocation3], 0  ;;  %s1041_s0 = inlined_call_operand.hbm [shape: bf16[2,16,16], index: 0, kind: input, shape index: {}]   ;;  %s1042_s1 = inlined_call_operand.hbm [shape: bf16[2,2,128,128], index: 1, kind: input, shape index: {}]   ;;  %s1043_s2 = inlined_call_operand.vmem [shape: f32[2,1,128], index: 2, kind: input, shape index: {}]   ;;  %s1044_s3 = inlined_call_operand.vmem [shape: bf16[16,128], index: 3, kind: input, shape index: {}]   ;;  %s1045_s4 = inlined_call_operand.hbm [shape: f32[16,128], index: 4, kind: output, shape index: {}]  }
   0x1   :  { %10 = vsyncpa [#allocation6], 0 }
   0x2   :  { %11 = vsyncpa [#allocation4], 0  ;;  %s914_s15 = smov [#allocation2]   ;;  %s842_s19 = scalar_lea.hbm %s1041_s0, 256 }
   0x3   :  { %s17_s16 = sshll.u32 %s914_s15, 4  ;;  %p843_p0 = scmp.ne.s32.totalorder %s1041_s0, %s842_s19  ;;  %s18_s16 = int_to_ptr.vmem [resolvable:$true] %s17_s16 }
   0x4   :  { %p846_p1 = scmp.lt.u32.totalorder %s842_s19, %s1041_s0 }
   0x6   :  { %p848_p2 = pnand %p846_p1, %p843_p0 }
   0x8   :  { %851 = shalt.err (!%p848_p2)
}
   0x9   :  { %s852_s24 = scalar_lea.vmem %s18_s16, 256  ;;  %p857_p4 = scmp.lt.s32.totalorder %s18_s16, %s18_s16 }
   0xa   :  { %p853_p3 = scmp.ne.s32.totalorder %s18_s16, %s852_s24  ;;  %p858_p5 = scmp.lt.s32.totalorder %s852_s24, %s852_s24 }
   0xc   :  { %p859_p6 = por %p858_p5, %p857_p4 }
   0xe   :  { %p860_p7 = pnand %p859_p6, %p853_p3 }
  0x10   :  { %863 = shalt.err (!%p860_p7)
}
  0x11   :  { %s915_s25 = smov 64   ;;  %s916_s26 = smov 4  }
  0x12   :  { %23 = dma.hbm_to_vmem [thread:$0]  %s1041_s0, 256, %s18_s16, [#allocation3], %s915_s25, %s915_s25, %s916_s26  }
  0x13   :  { %s917_s29 = smov [#allocation5]   ;;  %s864_s7 = scalar_lea.hbm %s1042_s1, 4096 }
  0x14   :  { %s29_s30 = sshll.u32 %s917_s29, 4  ;;  %p865_p8 = scmp.ne.s32.totalorder %s1042_s1, %s864_s7  ;;  %s30_s30 = int_to_ptr.vmem [resolvable:$true] %s29_s30 }
  0x15   :  { %p868_p9 = scmp.lt.u32.totalorder %s864_s7, %s1042_s1 }
  0x17   :  { %p870_p10 = pnand %p868_p9, %p865_p8 }
  0x19   :  { %873 = shalt.err (!%p870_p10)
}
  0x1a   :  { %s874_s12 = scalar_lea.vmem %s30_s30, 4096  ;;  %p879_p12 = scmp.lt.s32.totalorder %s30_s30, %s30_s30 }
  0x1b   :  { %p875_p11 = scmp.ne.s32.totalorder %s30_s30, %s874_s12  ;;  %p880_p13 = scmp.lt.s32.totalorder %s874_s12, %s874_s12 }
  0x1d   :  { %p881_p0 = por %p880_p13, %p879_p12 }
  0x1f   :  { %p882_p1 = pnand %p881_p0, %p875_p11 }
  0x21   :  { %885 = shalt.err (!%p882_p1)
}
  0x22   :  { %35 = dma.hbm_to_vmem [thread:$0]  %s1042_s1, 4096, %s30_s30, [#allocation6], %s915_s25, %s915_s25, %s916_s26  }
  0x23   :  { %908 = dma.done.wait [#allocation3], 256  }
  0x24   :  { %909 = vsyncadd [#allocation3], 4294967040 }
  0x25   :  { %910 = dma.done.wait [#allocation6], 4096  }
  0x26   :  { %911 = vsyncadd [#allocation6], 4294963200  ;;  %v918_v0 = vmov 0.0   ;;  %vm919_vm0 = vmmov 0   ;;  %v807_v1 = vld [vmem:[%s1044_s3] sm:$0xff]   ;;  %vm65_vm1 = vcmask 130048  }
  0x27   :  { %706 = vmatprep.subr.bf16.mxu0 %v918_v0  ;;  %708 = vmatprep.mubr.msk.bf16.mxu0 %vm919_vm0, %v918_v0  ;;  %v808_v2 = vld [vmem:[#allocation2] sm:$0xff]   ;;  %v809_v3 = vld [vmem:[#allocation5] sm:$0xff]   ;;  %v812_v5 = vld [vmem:[#allocation5 + $0x48] sm:$0xff]   ;;  %s920_s18 = smov [#allocation7]  }
  0x28   :  { %712 = vmatprep.subr.bf16.mxu1 %v918_v0  ;;  %728 = vmatprep.mubr.msk.bf16.mxu1 %vm919_vm0, %v918_v0  ;;  %v810_v4 = vld [vmem:[#allocation5 + $0x40] sm:$0xff]   ;;  %v811_v6 = vld [vmem:[#allocation5 + $0x8] sm:$0xff]   ;;  %v814_v7 = vld [vmem:[#allocation5 + $0x50] sm:$0xff]   ;;  %s613_s19 = sshll.u32 %s920_s18, 4  ;;  %s614_s19 = int_to_ptr.vmem [resolvable:$true] %s613_s19 }
  0x29   :  { %707 = vmatpush3.bf16.msra.mxu0 %v807_v1  ;;  %713 = vmatpush3.bf16.msra.mxu1 %v810_v4  ;;  %v813_v8 = vld [vmem:[#allocation5 + $0x10] sm:$0xff]   ;;  %v816_v9 = vld [vmem:[#allocation5 + $0x58] sm:$0xff]   ;;  %v817_v11 = vld [vmem:[#allocation5 + $0x20] sm:$0xff]   ;;  %s886_s20 = scalar_lea.vmem %s614_s19, 256  ;;  %p891_p3 = scmp.lt.s32.totalorder %s614_s19, %s614_s19 }
  0x2a   :  { %732 = vmatprep.subr.bf16.mxu0 %v918_v0  ;;  %714 = vmatprep.subr.bf16.mxu1 %v918_v0  ;;  %v815_v10 = vld [vmem:[#allocation5 + $0x18] sm:$0xff]   ;;  %v818_v12 = vld [vmem:[#allocation5 + $0x60] sm:$0xff]   ;;  %v820_v13 = vld [vmem:[#allocation5 + $0x68] sm:$0xff]   ;;  %p887_p2 = scmp.ne.s32.totalorder %s614_s19, %s886_s20  ;;  %p892_p4 = scmp.lt.s32.totalorder %s886_s20, %s886_s20 }
  0x2b   :  { %v819_v14 = vld [vmem:[#allocation5 + $0x28] sm:$0xff]   ;;  %v822_v15 = vld [vmem:[#allocation5 + $0x70] sm:$0xff]   ;;  %v823_v17 = vld [vmem:[#allocation5 + $0x38] sm:$0xff]  }
  0x2c   :  { %709 = vmatmul.mubr.msk.bf16.vlgmr.msra.gmra.mrb[0].mxu0 %vm65_vm1, %v808_v2  ;;  %v821_v16 = vld [vmem:[#allocation5 + $0x30] sm:$0xff]   ;;  %v824_v18 = vld [vmem:[#allocation5 + $0x78] sm:$0xff]   ;;  %v834_v28 = vld [vmem:[#allocation5 + $0xc0] sm:$0xff]   ;;  %p893_p5 = por %p892_p4, %p891_p3 }
  0x2d   :  { %733 = vmatpush3.bf16.msra.mxu0 %v809_v3  ;;  %748 = vmatprep.mubr.msk.bf16.mxu0 %vm919_vm0, %v918_v0  ;;  %v835_v29 = vld [vmem:[#allocation5 + $0xc8] sm:$0xff]   ;;  %v836_v30 = vld [vmem:[#allocation5 + $0xd0] sm:$0xff]   ;;  %v837_v31 = vld [vmem:[#allocation5 + $0xd8] sm:$0xff]  }
  0x2e   :  { %734 = vmatprep.subr.bf16.mxu0 %v918_v0  ;;  %715 = vmatpush3.bf16.msra.mxu1 %v812_v5  ;;  %v838_v32 = vld [vmem:[#allocation5 + $0xe0] sm:$0xff]   ;;  %v839_v33 = vld [vmem:[#allocation5 + $0xe8] sm:$0xff]   ;;  %v840_v34 = vld [vmem:[#allocation5 + $0xf0] sm:$0xff]   ;;  %p894_p6 = pnand %p893_p5, %p887_p2 }
  0x2f   :  { %716 = vmatprep.subr.bf16.mxu1 %v918_v0  ;;  %v645_v36 = vld [vmem:[%s1043_s2] ss:$0 sm:$0xff]  ;;  %v825_v47 = vld [vmem:[#allocation2 + $0x8] sm:$0xff]   ;;  %v826_v48 = vld [vmem:[#allocation5 + $0x80] sm:$0xff]  }
  0x30   :  { %v827_v49 = vld [vmem:[#allocation5 + $0x88] sm:$0xff]   ;;  %v828_v50 = vld [vmem:[#allocation5 + $0x90] sm:$0xff]   ;;  %v829_v51 = vld [vmem:[#allocation5 + $0x98] sm:$0xff]  }
  0x31   :  { %735 = vmatpush3.bf16.msra.mxu0 %v811_v6  ;;  %v830_v52 = vld [vmem:[#allocation5 + $0xa0] sm:$0xff]   ;;  %v831_v53 = vld [vmem:[#allocation5 + $0xa8] sm:$0xff]   ;;  %v832_v54 = vld [vmem:[#allocation5 + $0xb0] sm:$0xff]  }
  0x32   :  { %736 = vmatprep.subr.bf16.mxu0 %v918_v0  ;;  %717 = vmatpush3.bf16.msra.mxu1 %v814_v7  ;;  %v833_v55 = vld [vmem:[#allocation5 + $0xb8] sm:$0xff]   ;;  %v665_v4 = vld [vmem:[%s1043_s2 + $0x1] ss:$0 sm:$0xff] }
  0x33   :  { %718 = vmatprep.subr.bf16.mxu1 %v918_v0  ;;  %v841_v56 = vld [vmem:[#allocation5 + $0xf8] sm:$0xff]  }
  0x35   :  { %737 = vmatpush3.bf16.msra.mxu0 %v813_v8 }
  0x36   :  { %738 = vmatprep.subr.bf16.mxu0 %v918_v0  ;;  %719 = vmatpush3.bf16.msra.mxu1 %v816_v9 }
  0x37   :  { %720 = vmatprep.subr.bf16.mxu1 %v918_v0 }
  0x39   :  { %739 = vmatpush3.bf16.msra.mxu0 %v815_v10 }
  0x3a   :  { %740 = vmatprep.subr.bf16.mxu0 %v918_v0  ;;  %721 = vmatpush3.bf16.msra.mxu1 %v818_v12 }
  0x3b   :  { %722 = vmatprep.subr.bf16.mxu1 %v918_v0 }
  0x3d   :  { %741 = vmatpush3.bf16.msra.mxu0 %v817_v11 }
  0x3e   :  { %742 = vmatprep.subr.bf16.mxu0 %v918_v0  ;;  %723 = vmatpush3.bf16.msra.mxu1 %v820_v13 }
  0x3f   :  { %724 = vmatprep.subr.bf16.mxu1 %v918_v0 }
  0x41   :  { %743 = vmatpush3.bf16.msra.mxu0 %v819_v14 }
  0x42   :  { %744 = vmatprep.subr.bf16.mxu0 %v918_v0  ;;  %725 = vmatpush3.bf16.msra.mxu1 %v822_v15 }
  0x43   :  { %726 = vmatprep.subr.bf16.mxu1 %v918_v0 }
  0x45   :  { %745 = vmatpush3.bf16.msra.mxu0 %v821_v16 }
  0x46   :  { %746 = vmatprep.subr.bf16.mxu0 %v918_v0  ;;  %727 = vmatpush3.bf16.msra.mxu1 %v824_v18 }
  0x47   :  { %752 = vmatprep.subr.bf16.mxu1 %v918_v0 }
  0x49   :  { %747 = vmatpush3.bf16.msra.mxu0 %v823_v17 }
  0x4a   :  { %758 = vmatprep.subr.bf16.mxu0 %v918_v0 }
  0x4c   :  { %749 = vmatmul.mubr.bf16.vlgmr.msra.gmra.mrb[4].mxu0 %v807_v1 }
  0x4d   :  { %774 = vmatprep.mubr.msk.bf16.mxu0 %vm919_vm0, %v918_v0  ;;  %759 = vmatpush3.bf16.msra.mxu0 %v834_v28 }
  0x4e   :  { %760 = vmatprep.subr.bf16.mxu0 %v918_v0 }
  0x51   :  { %761 = vmatpush3.bf16.msra.mxu0 %v835_v29 }
  0x52   :  { %762 = vmatprep.subr.bf16.mxu0 %v918_v0 }
  0x55   :  { %763 = vmatpush3.bf16.msra.mxu0 %v836_v30 }
  0x56   :  { %764 = vmatprep.subr.bf16.mxu0 %v918_v0 }
  0x59   :  { %765 = vmatpush3.bf16.msra.mxu0 %v837_v31 }
  0x5a   :  { %766 = vmatprep.subr.bf16.mxu0 %v918_v0 }
  0x5d   :  { %767 = vmatpush3.bf16.msra.mxu0 %v838_v32 }
  0x5e   :  { %768 = vmatprep.subr.bf16.mxu0 %v918_v0 }
  0x61   :  { %769 = vmatpush3.bf16.msra.mxu0 %v839_v33 }
  0x62   :  { %770 = vmatprep.subr.bf16.mxu0 %v918_v0 }
  0x65   :  { %771 = vmatpush3.bf16.msra.mxu0 %v840_v34 }
  0x66   :  { %772 = vmatprep.subr.bf16.mxu0 %v918_v0 }
  0x69   :  { %773 = vmatpush3.bf16.msra.mxu0 %v841_v56 }
  0xff   :  { %v103_v19 = vpop.f32.mrb[0].mxu0 }
 0x100   :  { %v710_v20 = vpop.f32.mrb[1].mxu0 }
 0x101   :  { %v106_v21 = vpop.f32.mrb[2].mxu0 }
 0x102   :  { %v126_v22 = vpack.c.bf16 %v106_v21, %v103_v19  ;;  %v711_v23 = vpop.f32.mrb[3].mxu0 }
 0x104   :  { %729 = vmatmul.mubr.bf16.vlgmr.msra.gmra.mrb[0].mxu1 %v126_v22 }
 0x105   :  { %754 = vmatprep.mubr.msk.bf16.mxu1 %vm919_vm0, %v918_v0 }
 0x11f   :  { %v315_v24 = vpop.f32.mrb[4].mxu0 }
 0x120   :  { %v750_v25 = vpop.f32.mrb[5].mxu0 }
 0x121   :  { %v318_v26 = vpop.f32.mrb[6].mxu0 }
 0x122   :  { %v751_v27 = vpop.f32.mrb[7].mxu0 }
 0x1d7   :  { %v226_v35 = vpop.f32.mrb[0].mxu1 }
 0x1d8   :  { %v316_v37 = vadd.f32 %v315_v24, %v226_v35  ;;  %v730_v38 = vpop.f32.mrb[1].mxu1 }
 0x1d9   :  { %v229_v39 = vpop.f32.mrb[2].mxu1 }
 0x1da   :  { %v329_v40 = vadd.f32 %v645_v36, %v316_v37  ;;  %v319_v41 = vadd.f32 %v318_v26, %v229_v39  ;;  %v731_v42 = vpop.f32.mrb[3].mxu1 }
 0x1dc   :  { %v330_v43 = vadd.f32 %v645_v36, %v319_v41  ;;  %v331_v44 = vmax.f32 %v329_v40, 0.0 }
 0x1de   :  { %v332_v45 = vmax.f32 %v330_v43, 0.0 }
 0x1e0   :  { %v333_v46 = vpack.c.bf16 %v332_v45, %v331_v44 }
 0x1e2   :  { %753 = vmatpush3.bf16.msra.mxu1 %v333_v46 }
 0x1e3   :  { %778 = vmatprep.subr.bf16.mxu1 %v918_v0 }
 0x1e5   :  { %755 = vmatmul.mubr.msk.bf16.vlgmr.msra.gmra.mrb[4].mxu1 %vm65_vm1, %v825_v47 }
 0x1e6   :  { %779 = vmatpush3.bf16.msra.mxu1 %v826_v48  ;;  %794 = vmatprep.mubr.msk.bf16.mxu1 %vm919_vm0, %v918_v0 }
 0x1e7   :  { %780 = vmatprep.subr.bf16.mxu1 %v918_v0 }
 0x1ea   :  { %781 = vmatpush3.bf16.msra.mxu1 %v827_v49 }
 0x1eb   :  { %782 = vmatprep.subr.bf16.mxu1 %v918_v0 }
 0x1ee   :  { %783 = vmatpush3.bf16.msra.mxu1 %v828_v50 }
 0x1ef   :  { %784 = vmatprep.subr.bf16.mxu1 %v918_v0 }
 0x1f2   :  { %785 = vmatpush3.bf16.msra.mxu1 %v829_v51 }
 0x1f3   :  { %786 = vmatprep.subr.bf16.mxu1 %v918_v0 }
 0x1f6   :  { %787 = vmatpush3.bf16.msra.mxu1 %v830_v52 }
 0x1f7   :  { %788 = vmatprep.subr.bf16.mxu1 %v918_v0 }
 0x1fa   :  { %789 = vmatpush3.bf16.msra.mxu1 %v831_v53 }
 0x1fb   :  { %790 = vmatprep.subr.bf16.mxu1 %v918_v0 }
 0x1fe   :  { %791 = vmatpush3.bf16.msra.mxu1 %v832_v54 }
 0x1ff   :  { %792 = vmatprep.subr.bf16.mxu1 %v918_v0 }
 0x202   :  { %793 = vmatpush3.bf16.msra.mxu1 %v833_v55 }
 0x205   :  { %795 = vmatmul.mubr.bf16.vlgmr.msra.gmra.mrb[8].mxu1 %v333_v46 }
 0x2b8   :  { %v376_v57 = vpop.f32.mrb[4].mxu1 }
 0x2b9   :  { %v756_v58 = vpop.f32.mrb[5].mxu1 }
 0x2ba   :  { %v379_v59 = vpop.f32.mrb[6].mxu1 }
 0x2bb   :  { %v400_v60 = vpack.c.bf16 %v379_v59, %v376_v57  ;;  %v757_v61 = vpop.f32.mrb[7].mxu1 }
 0x2bd   :  { %775 = vmatmul.mubr.bf16.vlgmr.msra.gmra.mrb[8].mxu0 %v400_v60 }
 0x2d8   :  { %v589_v62 = vpop.f32.mrb[8].mxu1 }
 0x2d9   :  { %v796_v63 = vpop.f32.mrb[9].mxu1 }
 0x2da   :  { %v592_v1 = vpop.f32.mrb[10].mxu1 }
 0x2db   :  { %v797_v2 = vpop.f32.mrb[11].mxu1 }
 0x390   :  { %v500_v3 = vpop.f32.mrb[8].mxu0 }
 0x391   :  { %v590_v0 = vadd.f32 %v589_v62, %v500_v3  ;;  %v776_v5 = vpop.f32.mrb[9].mxu0 }
 0x392   :  { %v503_v6 = vpop.f32.mrb[10].mxu0 }
 0x393   :  { %v604_v7 = vadd.f32 %v665_v4, %v590_v0  ;;  %v593_v8 = vadd.f32 %v592_v1, %v503_v6  ;;  %v777_v9 = vpop.f32.mrb[11].mxu0 }
 0x395   :  { %606 = vst [vmem:[#allocation7] sm:$0xff] %v604_v7  ;;  %v605_v10 = vadd.f32 %v665_v4, %v593_v8 }
 0x397   :  { %607 = vst [vmem:[#allocation7 + $0x8] sm:$0xff] %v605_v10 }
 0x398   :  { %897 = shalt.err (!%p894_p6)
}
 0x399   :  { %s898_s22 = scalar_lea.hbm %s1045_s4, 256 }
 0x39a   :  { %p899_p7 = scmp.ne.s32.totalorder %s1045_s4, %s898_s22  ;;  %p902_p8 = scmp.lt.u32.totalorder %s898_s22, %s1045_s4 }
 0x39c   :  { %p904_p9 = pnand %p902_p8, %p899_p7 }
 0x39e   :  { %907 = shalt.err (!%p904_p9)
}
 0x39f   :  { %s921_s27 = smov 128   ;;  %s922_s28 = smov 8  }
 0x3a0   :  { %619 = dma.vmem_to_hbm [thread:$0]  %s614_s19, 256, %s1045_s4, [#allocation4], %s921_s27, %s921_s27, %s922_s28  }
 0x3a1   :  { %912 = dma.done.wait [#allocation4], 256  }
 0x3a2   :  { %913 = vsyncadd [#allocation4], 4294967040 }
 0x3a3   :  { %623 = vsyncpa [#allocation3], 1 }
 0x3a4   :  { %624 = vsyncpa [#allocation6], 1 }
 0x3a5   :  { %625 = vsyncpa [#allocation4], 1 }

</bundles_post_ra>
